<compile_context>
chip_gen: v7x
topology: tpu7x:2x2x1
jax: 0.10.0
libtpu: 0.0.40
codegen_flags: <defaults>
</compile_context>

<pallas_src>
import functools

import jax
import jax.numpy as jnp
from jax.experimental import pallas as pl
from jax.experimental.pallas import tpu as pltpu


def critic_kernel(x_ref, w1_ref, b1_ref, w2_ref, b2_ref, w3_ref, b3_ref, out_ref):
    # x_ref: (S+A, tb) bf16   (batch on lanes)
    # fc1: relu( W1 @ x + b1 )      -> (H, tb), f32 bias add / ReLU (VPU-safe on v5e)
    h1 = (jnp.dot(w1_ref[...], x_ref[...], preferred_element_type=jnp.float32)
          + b1_ref[...])
    h1 = jnp.maximum(h1, 0.0)

    # fc2: relu( W2 @ h1 + b2 )     (cast to the weight dtype only at the dot)
    h2 = (jnp.dot(w2_ref[...], h1.astype(w2_ref.dtype),
                  preferred_element_type=jnp.float32)
          + b2_ref[...])
    h2 = jnp.maximum(h2, 0.0)

    # fc3 on the VPU/XLU: q = sum_H( h2 * w3 ) + b3  -> lane-dense (1, tb) row.
    q = jnp.sum(h2 * w3_ref[...], axis=0, keepdims=True) + b3_ref[0, 0]
    out_ref[...] = q.astype(out_ref.dtype)


def _round_up(x, m):
    return (x + m - 1) // m * m


@functools.partial(jax.jit, static_argnames=("num_tiles", "use_bf16"))
def critic_forward(state, action, params, *, num_tiles=1, use_bf16=True):
    """state: (B, S), action: (B, A) -> q: (B, 1).

    num_tiles=1 (default): single grid step, whole batch in one tile, no padding.
    num_tiles=2: v7x-style split of a large batch across both TensorCores.
    """
    w1, b1, w2, b2, w3, b3 = params           # torch-native layouts, see init_params
    H, SA = w1.shape
    B = state.shape[0]

    op_dtype = jnp.bfloat16 if use_bf16 else jnp.float32
    # Pack concat([state, action]) and put batch on the lane axis: (S+A, B).
    xT = jnp.concatenate([state, action], axis=1).astype(op_dtype).T

    w1_c = w1.astype(op_dtype)
    w2_c = w2.astype(op_dtype)
    b1_c = b1.astype(jnp.float32)             # (H, 1)
    b2_c = b2.astype(jnp.float32)             # (H, 1)
    w3_c = w3.astype(jnp.float32)             # (H, 1) -- used on the VPU, keep f32
    b3_c = b3.astype(jnp.float32).reshape(1, 1)

    num_tiles = max(1, int(num_tiles))
    if num_tiles == 1:
        tb, Bp = B, B                          # block == full array: no padding needed
    else:
        tb = _round_up(-(-B // num_tiles), 128)  # lane tiles must be 128-aligned
        Bp = tb * num_tiles
    if Bp != B:
        xT = jnp.pad(xT, ((0, 0), (0, Bp - B)))

    keep = lambda i: (0, 0)                    # weights/biases stay VMEM-resident

    out = pl.pallas_call(
        critic_kernel,
        out_shape=jax.ShapeDtypeStruct((num_tiles, tb), jnp.float32),
        grid=(num_tiles,),
        in_specs=[
            pl.BlockSpec((SA, tb), lambda i: (0, i)),             # x tile (batch on lanes)
            pl.BlockSpec((H, SA), keep),                          # W1  (= fc1.weight)
            pl.BlockSpec((H, 1), keep),                           # b1
            pl.BlockSpec((H, H), keep),                           # W2  (= fc2.weight)
            pl.BlockSpec((H, 1), keep),                           # b2
            pl.BlockSpec((H, 1), keep),                           # w3  (= fc3.weight.T)
            pl.BlockSpec(memory_space=pltpu.MemorySpace.SMEM),    # b3 scalar
        ],
        out_specs=pl.BlockSpec((1, tb), lambda i: (i, 0)),
        compiler_params=pltpu.CompilerParams(
            dimension_semantics=("parallel",),   # shards batch tiles across TCs on v7x
        ),
    )(xT, w1_c, b1_c, w2_c, b2_c, w3_c, b3_c)

    # (num_tiles, tb) lane-dense rows -> (B, 1); padded columns (if any) are dropped.
    return out.reshape(-1)[:B].reshape(B, 1)


def init_params(key, state_dim, action_dim, hidden=64):
    # Deterministic init mimicking PyTorch's default U(-1/sqrt(fan_in), 1/sqrt(fan_in)).
    # Layouts match what the kernel consumes directly:
    #   w1 = fc1.weight (H, S+A), b1 = fc1.bias[:, None] (H, 1)
    #   w2 = fc2.weight (H, H),   b2 = fc2.bias[:, None] (H, 1)
    #   w3 = fc3.weight.T (H, 1), b3 = fc3.bias (1, 1)
    ks = jax.random.split(key, 6)
    in1 = state_dim + action_dim
    lim1 = 1.0 / jnp.sqrt(in1)
    lim2 = 1.0 / jnp.sqrt(hidden)
    w1 = jax.random.uniform(ks[0], (hidden, in1), jnp.float32, -lim1, lim1)
    b1 = jax.random.uniform(ks[1], (hidden, 1), jnp.float32, -lim1, lim1)
    w2 = jax.random.uniform(ks[2], (hidden, hidden), jnp.float32, -lim2, lim2)
    b2 = jax.random.uniform(ks[3], (hidden, 1), jnp.float32, -lim2, lim2)
    w3 = jax.random.uniform(ks[4], (hidden, 1), jnp.float32, -lim2, lim2)
    b3 = jax.random.uniform(ks[5], (1, 1), jnp.float32, -lim2, lim2)
    return (w1, b1, w2, b2, w3, b3)


def critic_reference(state, action, params, use_bf16=True):
    # Pure-JAX reference mirroring the kernel's mixed precision
    # (bf16 matmul operands, f32 accumulation, f32 bias/ReLU, f32 fc3 reduction).
    w1, b1, w2, b2, w3, b3 = params
    dt = jnp.bfloat16 if use_bf16 else jnp.float32
    x = jnp.concatenate([state, action], axis=1).astype(dt)
    h1 = (jnp.dot(x, w1.astype(dt).T, preferred_element_type=jnp.float32)
          + b1.reshape(1, -1))
    h1 = jnp.maximum(h1, 0.0)
    h2 = (jnp.dot(h1.astype(dt), w2.astype(dt).T, preferred_element_type=jnp.float32)
          + b2.reshape(1, -1))
    h2 = jnp.maximum(h2, 0.0)
    return jnp.sum(h2 * w3.reshape(1, -1), axis=1, keepdims=True) + b3.reshape(1, 1)


if __name__ == "__main__":
    B, state_dim, action_dim = 8, 8, 4

    key = jax.random.PRNGKey(0)
    k_s, k_a, k_p = jax.random.split(key, 3)
    state = jax.random.normal(k_s, (B, state_dim), jnp.float32)
    action = jax.random.normal(k_a, (B, action_dim), jnp.float32)
    params = init_params(k_p, state_dim, action_dim)

    # Default path: single grid step, no padding, no output slice.
    q = jax.block_until_ready(critic_forward(state, action, params))
    q_ref = critic_reference(state, action, params)
    assert q.shape == (B, 1)
    assert jnp.allclose(q, q_ref, atol=1e-4, rtol=1e-4), (
        f"max abs diff = {jnp.max(jnp.abs(q - q_ref))}")

    # Multi-tile path (v7x two-TensorCore split on a larger, ragged batch).
    B2 = 200
    k_s2, k_a2 = jax.random.split(jax.random.PRNGKey(1), 2)
    state2 = jax.random.normal(k_s2, (B2, state_dim), jnp.float32)
    action2 = jax.random.normal(k_a2, (B2, action_dim), jnp.float32)
    q2 = jax.block_until_ready(critic_forward(state2, action2, params, num_tiles=2))
    q2_ref = critic_reference(state2, action2, params)
    assert q2.shape == (B2, 1)
    assert jnp.allclose(q2, q2_ref, atol=1e-4, rtol=1e-4), (
        f"max abs diff = {jnp.max(jnp.abs(q2 - q2_ref))}")

    print("KERNEL_OK")
</pallas_src>

<mosaic_0001>
module attributes {stable_mosaic.version = 11 : i64} {
  func.func @critic_kernel(%arg0: i32, %arg1: memref<12x8xbf16, #tpu.memory_space<vmem>>, %arg2: memref<64x12xbf16, #tpu.memory_space<vmem>>, %arg3: memref<64x1xf32, #tpu.memory_space<vmem>>, %arg4: memref<64x64xbf16, #tpu.memory_space<vmem>>, %arg5: memref<64x1xf32, #tpu.memory_space<vmem>>, %arg6: memref<64x1xf32, #tpu.memory_space<vmem>>, %arg7: memref<1x1xf32, #tpu.memory_space<smem>>, %arg8: memref<1x8xf32, #tpu.memory_space<vmem>>) attributes {dimension_semantics = [#tpu.dimension_semantics<parallel>], iteration_bounds = array<i64: 1>, scalar_prefetch = 0 : i64, scratch_operands = 0 : i64, tpu.core_type = #tpu.core_type<tc>, window_params = [{transform_indices = @transform_0, window_bounds = array<i64: 12, 8>}, {pipeline_mode = #tpu.pipeline_mode<synchronous>, transform_indices = @transform_1, window_bounds = array<i64: 64, 12>}, {pipeline_mode = #tpu.pipeline_mode<synchronous>, transform_indices = @transform_2, window_bounds = array<i64: 64, 1>}, {pipeline_mode = #tpu.pipeline_mode<synchronous>, transform_indices = @transform_3, window_bounds = array<i64: 64, 64>}, {pipeline_mode = #tpu.pipeline_mode<synchronous>, transform_indices = @transform_4, window_bounds = array<i64: 64, 1>}, {pipeline_mode = #tpu.pipeline_mode<synchronous>, transform_indices = @transform_5, window_bounds = array<i64: 64, 1>}, {transform_indices = @transform_6, window_bounds = array<i64: 1, 1>}, {transform_indices = @transform_7, window_bounds = array<i64: 1, 8>}]} {
    %c0 = arith.constant 0 : index
    %c0_0 = arith.constant 0 : index
    %0 = vector.load %arg2[%c0, %c0_0] : memref<64x12xbf16, #tpu.memory_space<vmem>>, vector<64x12xbf16>
    %c0_1 = arith.constant 0 : index
    %c0_2 = arith.constant 0 : index
    %1 = vector.load %arg1[%c0_1, %c0_2] : memref<12x8xbf16, #tpu.memory_space<vmem>>, vector<12x8xbf16>
    %cst = arith.constant dense<0.000000e+00> : vector<64x8xf32>
    %2 = tpu.matmul %0, %1, %cst {dimension_numbers = #tpu.dot_dimension_numbers<[1], [0], [0], [1], [0, 0, 1, 1], [], []>} : vector<64x12xbf16>, vector<12x8xbf16>, vector<64x8xf32> -> vector<64x8xf32>
    %c0_3 = arith.constant 0 : index
    %c0_4 = arith.constant 0 : index
    %3 = vector.load %arg3[%c0_3, %c0_4] : memref<64x1xf32, #tpu.memory_space<vmem>>, vector<64x1xf32>
    %4 = vector.broadcast %3 : vector<64x1xf32> to vector<64x8xf32>
    %5 = arith.addf %2, %4 : vector<64x8xf32>
    %cst_5 = arith.constant 0.000000e+00 : f32
    %6 = vector.broadcast %cst_5 : f32 to vector<64x8xf32>
    %7 = arith.maximumf %5, %6 : vector<64x8xf32>
    %c0_6 = arith.constant 0 : index
    %c0_7 = arith.constant 0 : index
    %8 = vector.load %arg4[%c0_6, %c0_7] : memref<64x64xbf16, #tpu.memory_space<vmem>>, vector<64x64xbf16>
    %9 = arith.truncf %7 : vector<64x8xf32> to vector<64x8xbf16>
    %cst_8 = arith.constant dense<0.000000e+00> : vector<64x8xf32>
    %10 = tpu.matmul %8, %9, %cst_8 {dimension_numbers = #tpu.dot_dimension_numbers<[1], [0], [0], [1], [0, 0, 1, 1], [], []>} : vector<64x64xbf16>, vector<64x8xbf16>, vector<64x8xf32> -> vector<64x8xf32>
    %c0_9 = arith.constant 0 : index
    %c0_10 = arith.constant 0 : index
    %11 = vector.load %arg5[%c0_9, %c0_10] : memref<64x1xf32, #tpu.memory_space<vmem>>, vector<64x1xf32>
    %12 = vector.broadcast %11 : vector<64x1xf32> to vector<64x8xf32>
    %13 = arith.addf %10, %12 : vector<64x8xf32>
    %cst_11 = arith.constant 0.000000e+00 : f32
    %14 = vector.broadcast %cst_11 : f32 to vector<64x8xf32>
    %15 = arith.maximumf %13, %14 : vector<64x8xf32>
    %c0_12 = arith.constant 0 : index
    %c0_13 = arith.constant 0 : index
    %16 = vector.load %arg6[%c0_12, %c0_13] : memref<64x1xf32, #tpu.memory_space<vmem>>, vector<64x1xf32>
    %17 = vector.broadcast %16 : vector<64x1xf32> to vector<64x8xf32>
    %18 = arith.mulf %15, %17 : vector<64x8xf32>
    %cst_14 = arith.constant dense<0.000000e+00> : vector<8xf32>
    %19 = vector.multi_reduction <add>, %18, %cst_14 [0] : vector<64x8xf32> to vector<8xf32>
    %20 = vector.shape_cast %19 : vector<8xf32> to vector<1x8xf32>
    %c0_15 = arith.constant 0 : index
    %c0_16 = arith.constant 0 : index
    %21 = memref.load %arg7[%c0_15, %c0_16] : memref<1x1xf32, #tpu.memory_space<smem>>
    %22 = vector.broadcast %21 : f32 to vector<1x8xf32>
    %23 = arith.addf %20, %22 : vector<1x8xf32>
    %c0_17 = arith.constant 0 : index
    %c0_18 = arith.constant 0 : index
    %24 = vector.load %arg8[%c0_17, %c0_18] : memref<1x8xf32, #tpu.memory_space<vmem>>, vector<1x8xf32>
    tpu.vector_store %arg8[%c0_17, %c0_18], %23 {strides = array<i32>} : memref<1x8xf32, #tpu.memory_space<vmem>>, vector<1x8xf32>,
    return
  }
  func.func @transform_0(%arg0: i32) -> (i32, i32) {
    %c0_i32 = arith.constant 0 : i32
    %c0_i32_0 = arith.constant 0 : i32
    return %c0_i32, %arg0 : i32, i32
  }
  func.func @transform_1(%arg0: i32) -> (i32, i32) {
    %c0_i32 = arith.constant 0 : i32
    %c0_i32_0 = arith.constant 0 : i32
    %c0_i32_1 = arith.constant 0 : i32
    return %c0_i32, %c0_i32_0 : i32, i32
  }
  func.func @transform_2(%arg0: i32) -> (i32, i32) {
    %c0_i32 = arith.constant 0 : i32
    %c0_i32_0 = arith.constant 0 : i32
    %c0_i32_1 = arith.constant 0 : i32
    return %c0_i32, %c0_i32_0 : i32, i32
  }
  func.func @transform_3(%arg0: i32) -> (i32, i32) {
    %c0_i32 = arith.constant 0 : i32
    %c0_i32_0 = arith.constant 0 : i32
    %c0_i32_1 = arith.constant 0 : i32
    return %c0_i32, %c0_i32_0 : i32, i32
  }
  func.func @transform_4(%arg0: i32) -> (i32, i32) {
    %c0_i32 = arith.constant 0 : i32
    %c0_i32_0 = arith.constant 0 : i32
    %c0_i32_1 = arith.constant 0 : i32
    return %c0_i32, %c0_i32_0 : i32, i32
  }
  func.func @transform_5(%arg0: i32) -> (i32, i32) {
    %c0_i32 = arith.constant 0 : i32
    %c0_i32_0 = arith.constant 0 : i32
    %c0_i32_1 = arith.constant 0 : i32
    return %c0_i32, %c0_i32_0 : i32, i32
  }
  func.func @transform_6(%arg0: i32) -> (i32, i32) {
    %c0_i32 = arith.constant 0 : i32
    %c0_i32_0 = arith.constant 0 : i32
    %c0_i32_1 = arith.constant 0 : i32
    return %c0_i32, %c0_i32_0 : i32, i32
  }
  func.func @transform_7(%arg0: i32) -> (i32, i32) {
    %c0_i32 = arith.constant 0 : i32
    %c0_i32_0 = arith.constant 0 : i32
    return %arg0, %c0_i32 : i32, i32
  }
}

</mosaic_0001>

<bundles_post_ra>
// kernel: critic_forward.1
= control target key start
LH: loop header
LB: loop body
LE: loop exit
PB: predicated region body
PF: predicated region fallthrough
CT: control target
= control target key end

     0   :  { %vm125_vm0 = vcmask 1045504   ;;  %vm112_vm1 = vcmask 97280   ;;  %v567_v5 = vmov 0   ;;  %s739_s0 = inlined_call_operand.vmem [shape: bf16[12,8], index: 0, kind: input, shape index: {}]   ;;  %s740_s1 = inlined_call_operand.vmem [shape: bf16[64,12], index: 1, kind: input, shape index: {}]   ;;  %s741_s2 = inlined_call_operand.vmem [shape: f32[64,1], index: 2, kind: input, shape index: {}]   ;;  %s742_s3 = inlined_call_operand.vmem [shape: bf16[64,64], index: 3, kind: input, shape index: {}]   ;;  %s743_s4 = inlined_call_operand.vmem [shape: f32[64,1], index: 4, kind: input, shape index: {}]   ;;  %s744_s5 = inlined_call_operand.vmem [shape: f32[64,1], index: 5, kind: input, shape index: {}]   ;;  %s745_s6 = inlined_call_operand.<no memory space> [shape: f32[1,1], index: 6, kind: input, shape index: {}]   ;;  %s746_s7 = inlined_call_operand.hbm [shape: f32[1,8], index: 7, kind: output, shape index: {}]  }
   0x1   :  { %v534_v0 = vld [vmem:[%s739_s0] sm:$0x3f]   ;;  %v536_v3 = vld [vmem:[%s740_s1 + $0x8] sm:$0xff]   ;;  %v537_v4 = vld [vmem:[%s740_s1 + $0x10] sm:$0xff]   ;;  %532 = vset.pattern.permute.xlu0 %v567_v5  ;;  %533 = vset.pattern.permute.xlu1 %v567_v5 }
   0x2   :  { %v535_v1 = vld [vmem:[%s740_s1] sm:$0xff]   ;;  %529 = vmatprep.subr.msk.bf16.mxu0 %vm125_vm0, %v534_v0  ;;  %v127_v2 = vsel %vm125_vm0, %v534_v0, 0  ;;  %v41_v7 = vld [vmem:[%s741_s2 + $0x10] sm:$0xff]  ;;  %v40_v8 = vld [vmem:[%s741_s2 + $0x8] sm:$0xff] }
   0x3   :  { %496 = vmatpush3.bf16.msra.mxu0 %v127_v2  ;;  %497 = vmatprep.mubr.msk.bf16.mxu0 %vm112_vm1, %v535_v1  ;;  %v39_v6 = vld [vmem:[%s741_s2] sm:$0xff]  ;;  %v42_v9 = vld [vmem:[%s741_s2 + $0x18] sm:$0xff]  ;;  %v44_v12 = vld [vmem:[%s741_s2 + $0x28] sm:$0xff] }
   0x4   :  { %49 = vperm.xlu0 %532, %v39_v6   ;;  %59 = vperm.xlu1 %533, %v41_v7   ;;  %v538_v10 = vld [vmem:[%s740_s1 + $0x18] sm:$0xff]   ;;  %v43_v11 = vld [vmem:[%s741_s2 + $0x20] sm:$0xff]  ;;  %v45_v13 = vld [vmem:[%s741_s2 + $0x30] sm:$0xff] }
   0x5   :  { %v46_v14 = vld [vmem:[%s741_s2 + $0x38] sm:$0xff] }
   0x6   :  { %498 = vmatmul.mubr.msk.bf16.vlgmr.msra.gmra.mrb[0].mxu0 %vm112_vm1, %v536_v3 }
   0x7   :  { %501 = vmatprep.mubr.msk.bf16.mxu0 %vm112_vm1, %v537_v4 }
   0x8   :  { %54 = vperm.xlu0 %532, %v40_v8   ;;  %64 = vperm.xlu1 %533, %v42_v9  }
   0xc   :  { %69 = vperm.xlu0 %532, %v43_v11   ;;  %74 = vperm.xlu1 %533, %v44_v12  }
   0xe   :  { %502 = vmatmul.mubr.msk.bf16.gmra.mrb[4].mxu0 %vm112_vm1, %v538_v10 }
   0xf   :  { %13 = vsyncpa [#allocation4], 0  ;;  %v214_v15 = vld [vmem:[%s743_s4] sm:$0xff]  ;;  %v215_v16 = vld [vmem:[%s743_s4 + $0x8] sm:$0xff]  ;;  %vm282_vm2 = vcmask 523264   ;;  %vm424_vm3 = vcmask 64512  }
  0x10   :  { %79 = vperm.xlu0 %532, %v45_v13   ;;  %84 = vperm.xlu1 %533, %v46_v14   ;;  %v216_v17 = vld [vmem:[%s743_s4 + $0x10] sm:$0xff]  ;;  %v217_v18 = vld [vmem:[%s743_s4 + $0x18] sm:$0xff]  ;;  %v368_v19 = vld [vmem:[%s744_s5] sm:$0xff]  ;;  %s568_s13 = smov [#allocation3]   ;;  %vm449_vm4 = vcmask 57344  }
  0x11   :  { %v369_v20 = vld [vmem:[%s744_s5 + $0x8] sm:$0xff]  ;;  %v218_v21 = vld [vmem:[%s743_s4 + $0x20] sm:$0xff]  ;;  %v370_v22 = vld [vmem:[%s744_s5 + $0x10] sm:$0xff]  ;;  %s457_s14 = sshll.u32 %s568_s13, 4  ;;  %s458_s14 = int_to_ptr.vmem [resolvable:$true] %s457_s14 }
  0x12   :  { %v219_v23 = vld [vmem:[%s743_s4 + $0x28] sm:$0xff]  ;;  %v371_v24 = vld [vmem:[%s744_s5 + $0x18] sm:$0xff]  ;;  %v220_v25 = vld [vmem:[%s743_s4 + $0x30] sm:$0xff]  ;;  %s543_s15 = scalar_lea.vmem %s458_s14, 16  ;;  %s547_s16 = scalar_lea.vmem %s458_s14, 32 }
  0x13   :  { %v372_v26 = vld [vmem:[%s744_s5 + $0x20] sm:$0xff]  ;;  %v221_v27 = vld [vmem:[%s743_s4 + $0x38] sm:$0xff]  ;;  %v373_v28 = vld [vmem:[%s744_s5 + $0x28] sm:$0xff]  ;;  %p544_p0 = scmp.ne.s32.totalorder %s458_s14, %s543_s15  ;;  %p548_p1 = scmp.lt.s32.totalorder %s458_s14, %s458_s14 }
  0x14   :  { %224 = vperm.xlu0 %532, %v214_v15   ;;  %229 = vperm.xlu1 %533, %v215_v16   ;;  %v374_v29 = vld [vmem:[%s744_s5 + $0x30] sm:$0xff]  ;;  %v375_v30 = vld [vmem:[%s744_s5 + $0x38] sm:$0xff]  ;;  %v539_v31 = vld [vmem:[%s742_s3] sm:$0xff]   ;;  %p549_p2 = scmp.lt.s32.totalorder %s547_s16, %s543_s15 }
  0x15   :  { %v540_v32 = vld [vmem:[%s742_s3 + $0x10] sm:$0xff]   ;;  %513 = vmatprep.mubr.msk.bf16.mxu0 %vm282_vm2, %v539_v31  ;;  %v541_v5 = vld [vmem:[%s742_s3 + $0x8] sm:$0xff]   ;;  %v542_v6 = vld [vmem:[%s742_s3 + $0x18] sm:$0xff]  }
  0x16   :  { %517 = vmatprep.mubr.msk.bf16.mxu1 %vm282_vm2, %v540_v32  ;;  %p550_p3 = por %p549_p2, %p548_p1 }
  0x18   :  { %234 = vperm.xlu0 %532, %v216_v17   ;;  %239 = vperm.xlu1 %533, %v217_v18   ;;  %p551_p4 = pnand %p550_p3, %p544_p0 }
  0x1c   :  { %378 = vperm.xlu0 %532, %v368_v19   ;;  %383 = vperm.xlu1 %533, %v369_v20  }
  0x20   :  { %244 = vperm.xlu0 %532, %v218_v21   ;;  %388 = vperm.xlu1 %533, %v370_v22  }
  0x24   :  { %249 = vperm.xlu0 %532, %v219_v23   ;;  %393 = vperm.xlu1 %533, %v371_v24  }
  0x28   :  { %254 = vperm.xlu0 %532, %v220_v25   ;;  %398 = vperm.xlu1 %533, %v372_v26  }
  0x2c   :  { %259 = vperm.xlu0 %532, %v221_v27   ;;  %403 = vperm.xlu1 %533, %v373_v28  }
  0x30   :  { %408 = vperm.xlu0 %532, %v374_v29   ;;  %413 = vperm.xlu1 %533, %v375_v30  }
  0x83   :  { %v50_v33 = vpop.permute.xlu0 %49  ;;  %v60_v34 = vpop.permute.xlu1 %59 }
  0x87   :  { %v55_v35 = vpop.permute.xlu0 %54  ;;  %v65_v36 = vpop.permute.xlu1 %64 }
  0x8b   :  { %v70_v40 = vpop.permute.xlu0 %69  ;;  %v75_v45 = vpop.permute.xlu1 %74 }
  0x8f   :  { %v80_v52 = vpop.permute.xlu0 %79  ;;  %v85_v57 = vpop.permute.xlu1 %84 }
  0x93   :  { %v225_v7 = vpop.permute.xlu0 %224  ;;  %v230_v8 = vpop.permute.xlu1 %229 }
  0x97   :  { %v235_v9 = vpop.permute.xlu0 %234  ;;  %v240_v10 = vpop.permute.xlu1 %239 }
  0x9b   :  { %v379_v11 = vpop.permute.xlu0 %378  ;;  %v384_v12 = vpop.permute.xlu1 %383 }
  0x9f   :  { %v245_v13 = vpop.permute.xlu0 %244  ;;  %v389_v14 = vpop.permute.xlu1 %388 }
  0xa3   :  { %v250_v15 = vpop.permute.xlu0 %249  ;;  %v394_v16 = vpop.permute.xlu1 %393 }
  0xa7   :  { %v255_v17 = vpop.permute.xlu0 %254 }
  0xd9   :  { %v499_v37 = vpop.f32.mrb[0].mxu0 }
  0xda   :  { %v172_v38 = vadd.f32 %v499_v37, %v60_v34  ;;  %v163_v39 = vpop.f32.mrb[1].mxu0 }
  0xdb   :  { %v164_v41 = vadd.f32 %v163_v39, %v50_v33  ;;  %v500_v42 = vpop.f32.mrb[2].mxu0  ;;  %v399_v33 = vpop.permute.xlu1 %398 }
  0xdc   :  { %v175_v43 = vadd.f32 %v500_v42, %v65_v36  ;;  %v166_v44 = vpop.f32.mrb[3].mxu0  ;;  %v196_v47 = vmax.f32 %v172_v38, 0.0  ;;  %v260_v38 = vpop.permute.xlu0 %259 }
  0xdd   :  { %v167_v46 = vadd.f32 %v166_v44, %v55_v35  ;;  %v194_v49 = vmax.f32 %v164_v41, 0.0 }
  0xde   :  { %v197_v48 = vmax.f32 %v175_v43, 0.0 }
  0xdf   :  { %v195_v50 = vmax.f32 %v167_v46, 0.0 }
  0xe0   :  { %v211_v51 = vpack.c.bf16 %v197_v48, %v196_v47  ;;  %v404_v48 = vpop.permute.xlu1 %403 }
  0xe1   :  { %v210_v53 = vpack.c.bf16 %v195_v50, %v194_v49  ;;  %v503_v54 = vpop.f32.mrb[4].mxu0 }
  0xe2   :  { %v188_v55 = vadd.f32 %v503_v54, %v80_v52  ;;  %v179_v56 = vpop.f32.mrb[5].mxu0 }
  0xe3   :  { %v180_v58 = vadd.f32 %v179_v56, %v70_v40  ;;  %v504_v59 = vpop.f32.mrb[6].mxu0  ;;  %505 = vmatprep.subr.bf16.mxu0 %v210_v53  ;;  %521 = vmatprep.subr.bf16.mxu1 %v210_v53 }
  0xe4   :  { %v191_v60 = vadd.f32 %v504_v59, %v85_v57  ;;  %v182_v61 = vpop.f32.mrb[7].mxu0  ;;  %506 = vmatpush3.bf16.msra.mxu0 %v210_v53  ;;  %525 = vmatpush3.bf16.msra.mxu1 %v210_v53  ;;  %v200_v63 = vmax.f32 %v188_v55, 0.0  ;;  %v409_v57 = vpop.permute.xlu0 %408 }
  0xe5   :  { %v183_v62 = vadd.f32 %v182_v61, %v75_v45  ;;  %507 = vmatprep.subr.bf16.mxu0 %v211_v51  ;;  %522 = vmatprep.subr.bf16.mxu1 %v211_v51  ;;  %v198_v1 = vmax.f32 %v180_v58, 0.0  ;;  %v414_v61 = vpop.permute.xlu1 %413 }
  0xe6   :  { %v201_v0 = vmax.f32 %v191_v60, 0.0 }
  0xe7   :  { %v199_v2 = vmax.f32 %v183_v62, 0.0 }
  0xe8   :  { %v213_v3 = vpack.c.bf16 %v201_v0, %v200_v63  ;;  %508 = vmatpush3.bf16.msra.mxu0 %v211_v51  ;;  %526 = vmatpush3.bf16.msra.mxu1 %v211_v51 }
  0xe9   :  { %v212_v4 = vpack.c.bf16 %v199_v2, %v198_v1 }
  0xeb   :  { %509 = vmatprep.subr.bf16.mxu0 %v212_v4  ;;  %523 = vmatprep.subr.bf16.mxu1 %v212_v4 }
  0xec   :  { %510 = vmatpush3.bf16.msra.mxu0 %v212_v4  ;;  %527 = vmatpush3.bf16.msra.mxu1 %v212_v4 }
  0xed   :  { %511 = vmatprep.subr.bf16.mxu0 %v213_v3  ;;  %524 = vmatprep.subr.bf16.mxu1 %v213_v3 }
  0xf0   :  { %512 = vmatpush3.bf16.msra.mxu0 %v213_v3  ;;  %528 = vmatpush3.bf16.msra.mxu1 %v213_v3 }
  0xf3   :  { %514 = vmatmul.mubr.msk.bf16.vlgmr.msra.gmra.mrb[8].mxu0 %vm282_vm2, %v541_v5  ;;  %518 = vmatmul.mubr.msk.bf16.vlgmr.msra.gmra.mrb[0].mxu1 %vm282_vm2, %v542_v6 }
 0x1c6   :  { %v515_v18 = vpop.f32.mrb[8].mxu0  ;;  %v519_v19 = vpop.f32.mrb[0].mxu1 }
 0x1c7   :  { %v338_v20 = vadd.f32 %v515_v18, %v235_v9  ;;  %v329_v21 = vpop.f32.mrb[9].mxu0  ;;  %v345_v22 = vpop.f32.mrb[1].mxu1  ;;  %v354_v40 = vadd.f32 %v519_v19, %v255_v17 }
 0x1c8   :  { %v330_v23 = vadd.f32 %v329_v21, %v225_v7  ;;  %v516_v24 = vpop.f32.mrb[10].mxu0  ;;  %v520_v25 = vpop.f32.mrb[2].mxu1  ;;  %v346_v31 = vadd.f32 %v345_v22, %v245_v13 }
 0x1c9   :  { %v341_v26 = vadd.f32 %v516_v24, %v240_v10  ;;  %v332_v27 = vpop.f32.mrb[11].mxu0  ;;  %v348_v28 = vpop.f32.mrb[3].mxu1  ;;  %v362_v29 = vmax.f32 %v338_v20, 0.0  ;;  %v357_v43 = vadd.f32 %v520_v25, %v260_v38  ;;  %v366_v51 = vmax.f32 %v354_v40, 0.0 }
 0x1ca   :  { %v360_v30 = vmax.f32 %v330_v23, 0.0  ;;  %v333_v32 = vadd.f32 %v332_v27, %v230_v8  ;;  %v349_v37 = vadd.f32 %v348_v28, %v250_v15  ;;  %v364_v41 = vmax.f32 %v346_v31, 0.0 }
 0x1cb   :  { %v363_v35 = vmax.f32 %v341_v26, 0.0  ;;  %v418_v39 = vmul.f32 %v389_v14, %v362_v29  ;;  %v367_v55 = vmax.f32 %v357_v43, 0.0  ;;  %v422_v59 = vmul.f32 %v409_v57, %v366_v51 }
 0x1cc   :  { %v416_v34 = vmul.f32 %v379_v11, %v360_v30  ;;  %v361_v36 = vmax.f32 %v333_v32, 0.0  ;;  %v365_v47 = vmax.f32 %v349_v37, 0.0  ;;  %v420_v52 = vmul.f32 %v399_v33, %v364_v41 }
 0x1cd   :  { %v419_v45 = vmul.f32 %v394_v16, %v363_v35  ;;  %v428_v50 = vsel %vm424_vm3, %v418_v39, 0.0  ;;  %v423_v63 = vmul.f32 %v414_v61, %v367_v55  ;;  %v436_v2 = vsel %vm424_vm3, %v422_v59, 0.0 }
 0x1ce   :  { %v417_v42 = vmul.f32 %v384_v12, %v361_v36  ;;  %v425_v44 = vsel %vm424_vm3, %v416_v34, 0.0  ;;  %v421_v56 = vmul.f32 %v404_v48, %v365_v47  ;;  %v432_v60 = vsel %vm424_vm3, %v420_v52, 0.0 }
 0x1cf   :  { %v430_v54 = vsel %vm424_vm3, %v419_v45, 0.0  ;;  %v438_v4 = vsel %vm424_vm3, %v423_v63, 0.0  ;;  %v447_v11 = vstv %s745_s6 }
 0x1d0   :  { %v426_v46 = vsel %vm424_vm3, %v417_v42, 0.0  ;;  %v434_v0 = vsel %vm424_vm3, %v421_v56, 0.0 }
 0x1d1   :  { %v427_v49 = vadd.f32 %v426_v46, %v425_v44 }
 0x1d3   :  { %v429_v53 = vadd.f32 %v428_v50, %v427_v49 }
 0x1d5   :  { %v431_v58 = vadd.f32 %v430_v54, %v429_v53 }
 0x1d7   :  { %v433_v62 = vadd.f32 %v432_v60, %v431_v58 }
 0x1d9   :  { %v435_v1 = vadd.f32 %v434_v0, %v433_v62 }
 0x1db   :  { %v437_v3 = vadd.f32 %v436_v2, %v435_v1 }
 0x1dd   :  { %v439_v5 = vadd.f32 %v438_v4, %v437_v3 }
 0x1df   :  { %v440_v6 = vrot.slane %v439_v5, 4 }
 0x1e1   :  { %v441_v7 = vadd.f32 %v440_v6, %v439_v5 }
 0x1e3   :  { %v442_v8 = vrot.slane %v441_v7, 2 }
 0x1e5   :  { %v443_v9 = vadd.f32 %v442_v8, %v441_v7 }
 0x1e7   :  { %v444_v10 = vrot.slane %v443_v9, 1 }
 0x1e9   :  { %v445_v12 = vadd.f32 %v444_v10, %v443_v9 }
 0x1eb   :  { %v448_v13 = vadd.f32 %v447_v11, %v445_v12 }
 0x1ed   :  { %450 = vst.msk [vmem:[#allocation3] sm:$0x1] %vm449_vm4, %v448_v13 }
 0x1ee   :  { %554 = shalt.err (!%p551_p4)
}
 0x1ef   :  { %s555_s19 = scalar_lea.hbm %s746_s7, 16 }
 0x1f0   :  { %p556_p5 = scmp.ne.s32.totalorder %s746_s7, %s555_s19  ;;  %p559_p6 = scmp.lt.u32.totalorder %s555_s19, %s746_s7 }
 0x1f2   :  { %p561_p7 = pnand %p559_p6, %p556_p5 }
 0x1f4   :  { %564 = shalt.err (!%p561_p7)
}
 0x1f5   :  { %460 = dma.vmem_to_hbm [thread:$0]  %s458_s14, 16, %s746_s7, [#allocation4]  }
 0x1f6   :  { %565 = dma.done.wait [#allocation4], 16  }
 0x1f7   :  { %566 = vsyncadd [#allocation4], 4294967280 }
 0x1f8   :  { %464 = vsyncpa [#allocation4], 1 }

</bundles_post_ra>
